<compile_context>
chip_gen: v7x
topology: tpu7x:2x2x1
jax: 0.10.0
libtpu: 0.0.40
codegen_flags: <defaults>
</compile_context>

<pallas_src>
import jax
import jax.numpy as jnp
from jax.experimental import pallas as pl
from jax.experimental.pallas import tpu as pltpu

_LANE = 128
_MIB = 1024 * 1024


def _transpose_tile_kernel(x_ref, o_ref):
    # x_ref: (t_hw, t_c) tile ; o_ref: (t_c, t_hw) tile (batch dim squeezed).
    o_ref[...] = x_ref[...].T


def _round_up(x: int, m: int) -> int:
    return ((x + m - 1) // m) * m


def _vmem_budget_bytes() -> int:
    """Scoped VMEM to request: half of physical VMEM, capped at 64 MiB.

    -> 64 MiB on 128 MiB parts (v5e/v6e), 32 MiB on v7x (64 MiB per TC).
    """
    try:
        cap = pltpu.get_tpu_info().vmem_capacity_bytes
    except Exception:
        cap = 64 * _MIB  # conservative (v7x-sized) fallback
    return max(16 * _MIB, min(cap // 2, 64 * _MIB))


def _pick_tiles(hw: int, C: int, itemsize: int, block_bytes_target: int):
    """Tile sides: multiples of 128 (lane-dense in both layouts), byte-sized."""
    # t_c: lane dim of the input tile / sublane dim of the output tile.
    # Keep each contiguous input run >= ~2 KiB (dtype-aware) for DMA efficiency.
    c_target = max(_LANE, _round_up(2048 // itemsize, _LANE))
    t_c = min(_round_up(C, _LANE), c_target)
    # t_hw: sublane dim of input / lane dim of output; sized so one block is
    # ~block_bytes_target bytes.
    t_hw = block_bytes_target // (t_c * itemsize)
    t_hw = max(_LANE, (t_hw // _LANE) * _LANE)
    t_hw = min(t_hw, _round_up(hw, _LANE))
    return t_hw, t_c


def to_channels_first(x, *, tile_hw=None, tile_c=None):
    """x: (N, H, W, C) -> (N, C, H, W), same dtype, same values."""
    N, H, W, C = x.shape
    hw = H * W
    itemsize = jnp.dtype(x.dtype).itemsize

    # Tiny channel / spatial extents (e.g. C=3/4 images): lane padding in VMEM
    # would waste up to 128/C of the bandwidth — XLA's transpose wins here.
    if C < _LANE or hw < _LANE:
        return jnp.transpose(x, (0, 3, 1, 2))

    vmem_limit = _vmem_budget_bytes()
    # in + out blocks, each double-buffered -> ~4 resident buffers; keep the
    # per-block target at ~budget/8 (8 MiB blocks on v5e/v6e, 4 MiB on v7x).
    block_bytes_target = max(_MIB, vmem_limit // 8)

    t_hw, t_c = _pick_tiles(hw, C, itemsize, block_bytes_target)
    if tile_hw is not None:
        t_hw = tile_hw
    if tile_c is not None:
        t_c = tile_c

    x2 = x.reshape(N, hw, C)  # glue reshape (no data reordering)

    # hw-tile axis outermost: large, usually-even axis for v7x megacore split.
    grid = (pl.cdiv(hw, t_hw), N, pl.cdiv(C, t_c))

    cost = pl.CostEstimate(
        flops=0,
        transcendentals=0,
        bytes_accessed=2 * N * hw * C * itemsize,
    )

    out2 = pl.pallas_call(
        _transpose_tile_kernel,
        out_shape=jax.ShapeDtypeStruct((N, C, hw), x.dtype),
        grid_spec=pltpu.PrefetchScalarGridSpec(
            num_scalar_prefetch=0,
            grid=grid,
            in_specs=[
                pl.BlockSpec(
                    (pl.Squeezed(), t_hw, t_c),
                    lambda i, n, j: (n, i, j),
                )
            ],
            out_specs=pl.BlockSpec(
                (pl.Squeezed(), t_c, t_hw),
                lambda i, n, j: (n, j, i),
            ),
        ),
        compiler_params=pltpu.CompilerParams(
            dimension_semantics=("parallel", "parallel", "parallel"),
            vmem_limit_bytes=vmem_limit,
        ),
        cost_estimate=cost,
    )(x2)

    return out2.reshape(N, C, H, W)  # glue reshape back to NCHW spatial dims


if __name__ == "__main__":
    key = jax.random.PRNGKey(0)
    k0, k1, k2 = jax.random.split(key, 3)

    # 1) Module-typical tiny-C NHWC input (takes the small-C fallback path).
    N, H, W, C = 2, 16, 16, 4
    x = jax.random.normal(k0, (N, H, W, C), dtype=jnp.float32)
    y = to_channels_first(x)
    jax.block_until_ready(y)
    ref = jnp.transpose(x, (0, 3, 1, 2))
    assert y.shape == (N, C, H, W), y.shape
    assert y.dtype == x.dtype
    assert jnp.array_equal(y, ref), "mismatch vs reference (small-C path)"

    # 2) Pallas path with a forced multi-tile (hw, N, C) grid.
    N2, H2, W2, C2 = 2, 16, 32, 256  # hw = 512
    x2 = jax.random.normal(k1, (N2, H2, W2, C2), dtype=jnp.float32)
    y2 = to_channels_first(x2, tile_hw=256, tile_c=128)  # grid = (2, 2, 2)
    jax.block_until_ready(y2)
    ref2 = jnp.transpose(x2, (0, 3, 1, 2))
    assert y2.shape == (N2, C2, H2, W2), y2.shape
    assert jnp.array_equal(y2, ref2), "mismatch vs reference (tiled path)"

    # 3) Pallas path with irregular dims (exercises cdiv edge padding/masking).
    N3, H3, W3, C3 = 1, 30, 30, 192  # hw = 900 (not %128), C = 192 (not %128)
    x3 = jax.random.normal(k2, (N3, H3, W3, C3), dtype=jnp.bfloat16)
    y3 = to_channels_first(x3)
    jax.block_until_ready(y3)
    ref3 = jnp.transpose(x3, (0, 3, 1, 2))
    assert y3.shape == (N3, C3, H3, W3), y3.shape
    assert jnp.array_equal(y3, ref3), "mismatch vs reference (edge-block path)"

    print("KERNEL_OK")
</pallas_src>

<mosaic_0001>
module attributes {stable_mosaic.version = 11 : i64} {
  func.func @_transpose_tile_kernel(%arg0: i32, %arg1: i32, %arg2: i32, %arg3: memref<1x256x128xf32, #tpu.memory_space<vmem>>, %arg4: memref<1x128x256xf32, #tpu.memory_space<vmem>>) attributes {dimension_semantics = [#tpu.dimension_semantics<parallel>, #tpu.dimension_semantics<parallel>, #tpu.dimension_semantics<parallel>], iteration_bounds = array<i64: 2, 2, 2>, scalar_prefetch = 0 : i64, scratch_operands = 0 : i64, tpu.core_type = #tpu.core_type<tc>, window_params = [{transform_indices = @transform_0, window_bounds = array<i64: 1, 256, 128>}, {transform_indices = @transform_1, window_bounds = array<i64: 1, 128, 256>}]} {
    %c0 = arith.constant 0 : index
    %c0_0 = arith.constant 0 : index
    %c0_1 = arith.constant 0 : index
    %0 = vector.load %arg3[%c0, %c0_0, %c0_1] : memref<1x256x128xf32, #tpu.memory_space<vmem>>, vector<1x256x128xf32>
    %1 = vector.shape_cast %0 : vector<1x256x128xf32> to vector<256x128xf32>
    %2 = tpu.transpose %1, [1, 0] : vector<256x128xf32> -> vector<128x256xf32>
    %c0_2 = arith.constant 0 : index
    %c0_3 = arith.constant 0 : index
    %c0_4 = arith.constant 0 : index
    %3 = vector.load %arg4[%c0_2, %c0_3, %c0_4] : memref<1x128x256xf32, #tpu.memory_space<vmem>>, vector<1x128x256xf32>
    %4 = vector.shape_cast %3 : vector<1x128x256xf32> to vector<128x256xf32>
    %5 = vector.shape_cast %2 : vector<128x256xf32> to vector<1x128x256xf32>
    tpu.vector_store %arg4[%c0_2, %c0_3, %c0_4], %5 {strides = array<i32>} : memref<1x128x256xf32, #tpu.memory_space<vmem>>, vector<1x128x256xf32>,
    return
  }
  func.func @transform_0(%arg0: i32, %arg1: i32, %arg2: i32) -> (i32, i32, i32) {
    %c0_i32 = arith.constant 0 : i32
    return %arg1, %arg0, %arg2 : i32, i32, i32
  }
  func.func @transform_1(%arg0: i32, %arg1: i32, %arg2: i32) -> (i32, i32, i32) {
    %c0_i32 = arith.constant 0 : i32
    return %arg1, %arg2, %arg0 : i32, i32, i32
  }
}

</mosaic_0001>

<bundles_post_ra>
// kernel: tpu_custom_call.1
= control target key start
LH: loop header
LB: loop body
LE: loop exit
PB: predicated region body
PF: predicated region fallthrough
CT: control target
= control target key end

     0   :  { %6 = vsyncpa [#allocation3], 0  ;;  %s1078_s0 = inlined_call_operand.hbm [shape: f32[2,512,256], index: 0, kind: input, shape index: {}]   ;;  %s1079_s1 = inlined_call_operand.hbm [shape: f32[2,256,512], index: 1, kind: output, shape index: {}]  }
   0x1   :  { %8 = vsyncpa [#allocation3 + $0x1], 0 }
   0x2   :  { %9 = vsyncpa [#allocation4], 0 }
   0x3   :  { %11 = vsyncpa [#allocation4 + $0x1], 0  ;;  %s749_s6 = smov 0   ;;  %s751_s7 = smov 0  }
   0x4   :  { %s753_s8 = smov 0   ;;  %s755_s9 = smov 0  }
   0x5   :  { %s757_s10 = smov 0   ;;  %s759_s11 = smov 0  }
   0x6   :  { %s761_s12 = smov 0   ;;  %s763_s13 = smov 0  }
   0x7   :  { %s765_s14 = smov 0   ;;  %s767_s15 = smov 0  }
   0x8   :  { %s769_s16 = smov 0   ;;  %s771_s17 = smov 0  }
   0x9   :  { %s773_s18 = smov 0  }
   0xa LB: > { %1085 = sst [smem:[#allocation8_spill]] %s725_s17  ;;  %s415_s19 = sadd.s32 4294967295, %s729_s18   ;;  %s729_s18 = sphi %s773_s18, %s17_s18   ;;  %s725_s17 = sphi %s771_s17, %s1103_s17   ;;  %s721_s16 = sphi %s769_s16, %s1113_s16   ;;  %s717_s15 = sphi %s767_s15, %s1112_s15   ;;  %s713_s14 = sphi %s765_s14, %s1100_s14   ;;  %s709_s13 = sphi %s763_s13, %s1111_s13   ;;  %s705_s12 = sphi %s761_s12, %s1110_s12   ;;  %s701_s11 = sphi %s759_s11, %s1109_s11   ;;  %s697_s10 = sphi %s757_s10, %s1108_s10   ;;  %s693_s9 = sphi %s755_s9, %s1107_s9   ;;  %s689_s8 = sphi %s753_s8, %s1106_s8   ;;  %s685_s7 = sphi %s751_s7, %s1105_s7   ;;  %s681_s6 = sphi %s749_s6, %s1104_s6  }
   0xb   : > { %s416_s20 = sadd.s32 4294967294, %s729_s18   ;;  %s29_s21 = sadd.s32 1, %s717_s15 }
   0xc   : > { %s32_s22 = sadd.s32 1, %s721_s16  ;;  %p30_p0 = scmp.ge.s32.totalorder %s29_s21, 2 }
   0xd   : > { %s36_s23 = sadd.s32 1, %s725_s17  ;;  %p54_p1 = scmp.ne.s32.totalorder %s701_s11, %s697_s10 }
   0xe   : > { %s1115_s21 = smov (%p30_p0, %s29_s21), 0  ;;  %s1117_s22 = smov (!%p30_p0, %s32_s22), %s721_s16 }
   0xf   : > { %1086 = sst [smem:[#allocation9_spill]] %s1115_s21  ;;  %s43_s25 = ssub.s32 %s717_s15, %s1115_s21 }
  0x10   : > { %p55_p2 = scmp.eq.s32.totalorder %s729_s18, 0  ;;  %p34_p3 = scmp.ge.s32.totalorder %s1117_s22, 2 }
  0x11   : > { %p60_p4 = scmp.ne.s32.totalorder %s697_s10, %s693_s9  ;;  %p61_p6 = scmp.eq.s32.totalorder %s415_s19, 0 }
  0x12   : > { %p830_p5 = por %p55_p2, %p54_p1  ;;  %s1119_s22 = smov (%p34_p3, %s1117_s22), 0 }
  0x13   : > { %1088 = sst [smem:[#allocation10_spill]] %s1119_s22  ;;  %s1121_s23 = smov (!%p34_p3, %s36_s23), %s725_s17 }
  0x14   : > { %s40_s27 = ssub.s32 %s721_s16, %s1119_s22  ;;  %p839_p7 = por %p61_p6, %p60_p4 }
  0x15   : > { %p38_p8 = scmp.ge.s32.totalorder %s1121_s23, 2  ;;  %s72_s29 = sor.u32 %s43_s25, %s40_s27 }
  0x16   : > { %s77_s30 = sadd.s32 1, %s689_s8  ;;  %p87_p9 = scmp.ne.s32.totalorder %s689_s8, %s685_s7 }
  0x17   : > { %s1123_s23 = smov (%p38_p8, %s1121_s23), 0  ;;  %p88_p10 = scmp.eq.s32.totalorder %s415_s19, 7 }
  0x18   : > { %1090 = sst [smem:[#allocation11_spill]] %s1123_s23  ;;  %p93_p11 = scmp.ne.s32.totalorder %s685_s7, %s681_s6 }
  0x19   : > { %s41_s2 = ssub.s32 %s725_s17, %s1123_s23  ;;  %p94_p12 = scmp.eq.s32.totalorder %s416_s20, 7 }
  0x1a   : > { %s42_s3 = sor.u32 %s41_s2, %s40_s27  ;;  %s74_s4 = sor.u32 %s72_s29, %s41_s2 }
  0x1b   : > { %s44_s5 = sor.u32 %s43_s25, %s42_s3  ;;  %p75_p13 = scmp.eq.s32.totalorder %s74_s4, 0 }
  0x1c   : > { %p45_p0 = scmp.eq.s32.totalorder %s44_s5, 0  ;;  %p852_p1 = por %p88_p10, %p87_p9 }
  0x1d   : > { %s857_s24 = scalar_select %p75_p13, %s689_s8, %s77_s30  }
  0x1e   : > { %s1091_s9 = scalar_select %p852_p1, 1, 0 }
  0x1f   : > { %1092 = sst [smem:[#allocation12_spill]] %s857_s24  ;;  %s1093_s22 = sadd.s32 1, %s701_s11 }
  0x20   : > { %s862_s19 = scalar_select %p45_p0, %s701_s11, %s1093_s22  }
  0x21   : > { %p864_p2 = por %p94_p12, %p93_p11  ;;  %p449_p3 = scmp.lt.s32.totalorder %s729_s18, 8 }
  0x22   : > { %s114_s20 = sand.u32 1, %s701_s11   ;;  %s435_s25 = sshll.u32 %s725_s17, 6 }
  0x23   : > { %s1094_s21 = scalar_select %p864_p2, 1, 0 }
  0x24   : > { %s419_s27 = sshll.u32 %s114_s20, 8  ;;  %s124_s29 = sadd.s32 %s717_s15, %s435_s25 }
  0x25   : > { %s422_s2 = sshll.u32 %s721_s16, 7  ;;  %s118_s4 = scalar_lea.vmem [#allocation2], %s419_s27 }
  0x26   : > { %s126_s3 = sadd.s32 %s422_s2, %s124_s29  ;;  %s129_s5 = sshll.u32 %s118_s4, 4  ;;  %s873_s5 = int_to_ptr.vmem [resolvable:$true] %s129_s5 }
  0x27   : > { %s423_s23 = sshll.u32 %s126_s3, 7  ;;  %p882_p4 = pnand %p449_p3, %p830_p5 }
  0x28   : > { %s878_s22 = scalar_lea.hbm %s1078_s0, %s423_s23  ;;  %s886_s27 = scalar_lea.sflag [#allocation3], %s114_s20 }
  0x29   : > { %s561_s25 = scalar_lea.hbm %s878_s22, 4096  ;;  %p563_p8 = pneg %p882_p4 }
  0x2a   : > { %p562_p6 = scmp.ne.s32.totalorder %s878_s22, %s561_s25  ;;  %s566_s26 = scalar_lea.hbm %s1078_s0, 32768 }
  0x2b   : > { %p567_p5 = scmp.lt.u32.totalorder %s878_s22, %s1078_s0  ;;  %p568_p11 = scmp.lt.u32.totalorder %s566_s26, %s561_s25 }
  0x2c   : > { %p564_p9 = pnand %p563_p8, %p562_p6  ;;  %p570_p13 = scmp.lt.u32.totalorder %s561_s25, %s878_s22 }
  0x2d   : > { %p569_p12 = por %p568_p11, %p567_p5 }
  0x2e   : > { %p565_p10 = pneg %p564_p9 }
  0x2f   : > { %p571_p0 = por %p570_p13, %p569_p12 }
  0x31   : > { %p572_p3 = pnand %p571_p0, %p565_p10 }
  0x33   : > { %575 = shalt.err (!%p572_p3)
}
  0x34   : > { %s576_s20 = scalar_lea.vmem %s873_s5, 4096  ;;  %s731_s3 = smov [#allocation2]  }
  0x35   : > { %p577_p6 = scmp.ne.s32.totalorder %s873_s5, %s576_s20  ;;  %s581_s4 = sshll.u32 %s731_s3, 4  ;;  %s582_s4 = int_to_ptr.vmem [resolvable:$false] %s581_s4 }
  0x36   : > { %s583_s30 = scalar_lea.vmem %s582_s4, 8192  ;;  %p584_p1 = scmp.lt.s32.totalorder %s873_s5, %s582_s4 }
  0x37   : > { %p579_p9 = pnand %p577_p6, %p563_p8  ;;  %p585_p5 = scmp.lt.s32.totalorder %s583_s30, %s576_s20 }
  0x39   : > { %p580_p2 = pneg %p579_p9  ;;  %p586_p11 = por %p585_p5, %p584_p1 }
  0x3b   : > { %p587_p12 = pnand %p586_p11, %p580_p2 }
  0x3d   : > { %590 = shalt.err (!%p587_p12)
}
  0x3e   : > { %s732_s25 = smov 256   ;;  %s733_s23 = smov 128  }
  0x3f   : > { %s734_s24 = smov 8   ;;  %p424_p8 = scmp.ge.s32.totalorder %s729_s18, 1 }
  0x40   : > { %444 = dma.hbm_to_vmem [thread:$0]  (!%p882_p4), %s878_s22, 4096, %s873_s5, %s886_s27, %s732_s25, %s733_s23, %s734_s24  }
  0x41   : > { %p137_p10 = scmp.lt.s32.totalorder %s729_s18, 9 }
  0x43   : > { %p138_p13 = pnand %p424_p8, %p137_p10 }
  0x44   : > { %s143_s26 = sand.u32 (!%p138_p13), 1, %s697_s10  }
  0x45   : > { %141 = sbr.rel (%p138_p13) target bundleno = 284 (0x11c), region = 24  ;;  %s425_s29 = sshll.u32 (!%p138_p13), %s143_s26, 8 }
  0x46   : > { %s144_s2 = scalar_lea.sflag (!%p138_p13), [#allocation3], %s143_s26  ;;  %s917_s20 = scalar_lea.vmem (!%p138_p13), [#allocation2], %s425_s29 }
  0x4c   : > { %672 = dma.done.wait (%p839_p7), %s144_s2, 4096  }
  0x4d   : > { %674 = vsyncadd (%p839_p7), %s144_s2, 4294963200  ;;  %v185_v0 = vld [vmem:[%s917_s20 + $0x80] sm:$0xff]  ;;  %v186_v2 = vld [vmem:[%s917_s20 + $0x88] sm:$0xff]  ;;  %s163_s17 = sand.u32 1, %s685_s7   ;;  %s429_s22 = sshll.u32 %s713_s14, 1 }
  0x4e   : > { %v169_v1 = vld [vmem:[%s917_s20] sm:$0xff]  ;;  %233 = vxpose.xlu1.b32.start [1/16] %v185_v0, 128  ;;  %v170_v3 = vld [vmem:[%s917_s20 + $0x8] sm:$0xff]  ;;  %v187_v4 = vld [vmem:[%s917_s20 + $0x90] sm:$0xff]  ;;  %s426_s28 = sshll.u32 %s163_s17, 8  ;;  %s436_s27 = sshll.u32 %s705_s12, 6 }
  0x4f   : > { %201 = vxpose.xlu0.b32.start [1/16] %v169_v1, 128  ;;  %v171_v5 = vld [vmem:[%s917_s20 + $0x10] sm:$0xff]  ;;  %v188_v6 = vld [vmem:[%s917_s20 + $0x98] sm:$0xff]  ;;  %v189_v8 = vld [vmem:[%s917_s20 + $0xa0] sm:$0xff]  ;;  %s958_s5 = scalar_lea.vmem [#allocation5], %s426_s28  ;;  %s311_s3 = sadd.s32 %s436_s27, %s429_s22 }
  0x50   : > { %v172_v7 = vld [vmem:[%s917_s20 + $0x18] sm:$0xff]  ;;  %v173_v9 = vld [vmem:[%s917_s20 + $0x20] sm:$0xff]  ;;  %v190_v10 = vld [vmem:[%s917_s20 + $0xa8] sm:$0xff]  ;;  %s431_s4 = sshll.u32 %s709_s13, 7  ;;  %s316_s14 = sshll.u32 %s958_s5, 4  ;;  %s999_s14 = int_to_ptr.vmem [resolvable:$true] %s316_s14 }
  0x51   : > { %v174_v11 = vld [vmem:[%s917_s20 + $0x28] sm:$0xff]  ;;  %v191_v12 = vld [vmem:[%s917_s20 + $0xb0] sm:$0xff]  ;;  %v192_v14 = vld [vmem:[%s917_s20 + $0xb8] sm:$0xff]  ;;  %s313_s30 = sadd.s32 %s431_s4, %s311_s3  ;;  %s1005_s24 = scalar_lea.sflag [#allocation4], %s163_s17 }
  0x52   : > { %234 = vxpose.xlu1.b32.cont [2/16] %v186_v2, 128  ;;  %v175_v13 = vld [vmem:[%s917_s20 + $0x30] sm:$0xff]  ;;  %v176_v15 = vld [vmem:[%s917_s20 + $0x38] sm:$0xff]  ;;  %v193_v16 = vld [vmem:[%s917_s20 + $0xc0] sm:$0xff]  ;;  %s432_s25 = sshll.u32 %s313_s30, 7  ;;  %s591_s26 = scalar_lea.vmem %s999_s14, 4096 }
  0x53   : > { %202 = vxpose.xlu0.b32.cont [2/16] %v170_v3, 128  ;;  %v177_v17 = vld [vmem:[%s917_s20 + $0x40] sm:$0xff]  ;;  %v194_v18 = vld [vmem:[%s917_s20 + $0xc8] sm:$0xff]  ;;  %v195_v20 = vld [vmem:[%s917_s20 + $0xd0] sm:$0xff]  ;;  %s997_s13 = scalar_lea.hbm %s1079_s1, %s432_s25  ;;  %p592_p7 = scmp.ne.s32.totalorder %s999_s14, %s591_s26 }
  0x54   : > { %v178_v19 = vld [vmem:[%s917_s20 + $0x48] sm:$0xff]  ;;  %v179_v21 = vld [vmem:[%s917_s20 + $0x50] sm:$0xff]  ;;  %v196_v22 = vld [vmem:[%s917_s20 + $0xd8] sm:$0xff]  ;;  %p1096_p1 = scmp.ne.s32.totalorder %s1091_s9, 0  ;;  %s735_s29 = smov [#allocation5]  }
  0x55   : > { %v180_v23 = vld [vmem:[%s917_s20 + $0x58] sm:$0xff]  ;;  %v197_v24 = vld [vmem:[%s917_s20 + $0xe0] sm:$0xff]  ;;  %v198_v26 = vld [vmem:[%s917_s20 + $0xe8] sm:$0xff]  ;;  %s595_s2 = sshll.u32 %s735_s29, 4  ;;  %s596_s2 = int_to_ptr.vmem [resolvable:$false] %s595_s2 }
  0x56   : > { %235 = vxpose.xlu1.b32.cont [3/16] %v187_v4, 128  ;;  %v181_v25 = vld [vmem:[%s917_s20 + $0x60] sm:$0xff]  ;;  %v182_v27 = vld [vmem:[%s917_s20 + $0x68] sm:$0xff]  ;;  %v199_v28 = vld [vmem:[%s917_s20 + $0xf0] sm:$0xff]  ;;  %p593_p2 = pnand %p592_p7, %p1096_p1  ;;  %p598_p0 = scmp.lt.s32.totalorder %s999_s14, %s596_s2 }
  0x57   : > { %203 = vxpose.xlu0.b32.cont [3/16] %v171_v5, 128  ;;  %v183_v29 = vld [vmem:[%s917_s20 + $0x70] sm:$0xff]  ;;  %v200_v30 = vld [vmem:[%s917_s20 + $0xf8] sm:$0xff] }
  0x58   : > { %v184_v31 = vld [vmem:[%s917_s20 + $0x78] sm:$0xff]  ;;  %p594_p4 = pneg %p593_p2  ;;  %s597_s20 = scalar_lea.vmem %s596_s2, 8192 }
  0x59   : > { %p599_p3 = scmp.lt.s32.totalorder %s597_s20, %s591_s26 }
  0x5a   : > { %236 = vxpose.xlu1.b32.cont [4/16] %v188_v6, 128 }
  0x5b   : > { %204 = vxpose.xlu0.b32.cont [4/16] %v172_v7, 128  ;;  %p600_p6 = por %p599_p3, %p598_p0 }
  0x5d   : > { %p601_p9 = pnand %p600_p6, %p594_p4 }
  0x5e   : > { %237 = vxpose.xlu1.b32.cont [5/16] %v189_v8, 128 }
  0x5f   : > { %205 = vxpose.xlu0.b32.cont [5/16] %v173_v9, 128 }
  0x62   : > { %238 = vxpose.xlu1.b32.cont [6/16] %v190_v10, 128 }
  0x63   : > { %206 = vxpose.xlu0.b32.cont [6/16] %v174_v11, 128 }
  0x66   : > { %239 = vxpose.xlu1.b32.cont [7/16] %v191_v12, 128 }
  0x67   : > { %207 = vxpose.xlu0.b32.cont [7/16] %v175_v13, 128 }
  0x6a   : > { %240 = vxpose.xlu1.b32.cont [8/16] %v192_v14, 128 }
  0x6b   : > { %208 = vxpose.xlu0.b32.cont [8/16] %v176_v15, 128 }
  0x6e   : > { %241 = vxpose.xlu1.b32.cont [9/16] %v193_v16, 128 }
  0x6f   : > { %209 = vxpose.xlu0.b32.cont [9/16] %v177_v17, 128 }
  0x72   : > { %242 = vxpose.xlu1.b32.cont [10/16] %v194_v18, 128 }
  0x73   : > { %210 = vxpose.xlu0.b32.cont [10/16] %v178_v19, 128 }
  0x76   : > { %243 = vxpose.xlu1.b32.cont [11/16] %v195_v20, 128 }
  0x77   : > { %211 = vxpose.xlu0.b32.cont [11/16] %v179_v21, 128 }
  0x7a   : > { %244 = vxpose.xlu1.b32.cont [12/16] %v196_v22, 128 }
  0x7b   : > { %212 = vxpose.xlu0.b32.cont [12/16] %v180_v23, 128 }
  0x7e   : > { %245 = vxpose.xlu1.b32.cont [13/16] %v197_v24, 128 }
  0x7f   : > { %213 = vxpose.xlu0.b32.cont [13/16] %v181_v25, 128 }
  0x82   : > { %246 = vxpose.xlu1.b32.cont [14/16] %v198_v26, 128 }
  0x83   : > { %214 = vxpose.xlu0.b32.cont [14/16] %v182_v27, 128 }
  0x86   : > { %247 = vxpose.xlu1.b32.cont [15/16] %v199_v28, 128 }
  0x87   : > { %215 = vxpose.xlu0.b32.cont [15/16] %v183_v29, 128 }
  0x8a   : > { %248 = vxpose.xlu1.b32.end [16/16] %v200_v30, 128 }
  0x8b   : > { %216 = vxpose.xlu0.b32.end [16/16] %v184_v31, 128 }
  0xce   : > { %v249_v32 = vpop.trf.xlu1 }
  0xcf   : > { %v217_v33 = vpop.trf.xlu0  ;;  %266 = vst [vmem:[%s958_s5 + $0x8] sm:$0xff] %v249_v32 }
  0xd0   : > { %265 = vst [vmem:[%s958_s5] sm:$0xff] %v217_v33 }
  0xd2   : > { %v250_v34 = vpop.trf.xlu1 }
  0xd3   : > { %v218_v35 = vpop.trf.xlu0  ;;  %268 = vst [vmem:[%s958_s5 + $0x18] sm:$0xff] %v250_v34 }
  0xd4   : > { %267 = vst [vmem:[%s958_s5 + $0x10] sm:$0xff] %v218_v35 }
  0xd6   : > { %v251_v36 = vpop.trf.xlu1 }
  0xd7   : > { %v219_v37 = vpop.trf.xlu0  ;;  %270 = vst [vmem:[%s958_s5 + $0x28] sm:$0xff] %v251_v36 }
  0xd8   : > { %269 = vst [vmem:[%s958_s5 + $0x20] sm:$0xff] %v219_v37 }
  0xda   : > { %v252_v38 = vpop.trf.xlu1 }
  0xdb   : > { %v220_v39 = vpop.trf.xlu0  ;;  %272 = vst [vmem:[%s958_s5 + $0x38] sm:$0xff] %v252_v38 }
  0xdc   : > { %271 = vst [vmem:[%s958_s5 + $0x30] sm:$0xff] %v220_v39 }
  0xde   : > { %v253_v40 = vpop.trf.xlu1 }
  0xdf   : > { %v221_v41 = vpop.trf.xlu0  ;;  %274 = vst [vmem:[%s958_s5 + $0x48] sm:$0xff] %v253_v40 }
  0xe0   : > { %273 = vst [vmem:[%s958_s5 + $0x40] sm:$0xff] %v221_v41 }
  0xe2   : > { %v254_v42 = vpop.trf.xlu1 }
  0xe3   : > { %v222_v43 = vpop.trf.xlu0  ;;  %276 = vst [vmem:[%s958_s5 + $0x58] sm:$0xff] %v254_v42 }
  0xe4   : > { %275 = vst [vmem:[%s958_s5 + $0x50] sm:$0xff] %v222_v43 }
  0xe6   : > { %v255_v44 = vpop.trf.xlu1 }
  0xe7   : > { %v223_v45 = vpop.trf.xlu0  ;;  %278 = vst [vmem:[%s958_s5 + $0x68] sm:$0xff] %v255_v44 }
  0xe8   : > { %277 = vst [vmem:[%s958_s5 + $0x60] sm:$0xff] %v223_v45 }
  0xea   : > { %v256_v46 = vpop.trf.xlu1 }
  0xeb   : > { %v224_v47 = vpop.trf.xlu0  ;;  %280 = vst [vmem:[%s958_s5 + $0x78] sm:$0xff] %v256_v46 }
  0xec   : > { %279 = vst [vmem:[%s958_s5 + $0x70] sm:$0xff] %v224_v47 }
  0xee   : > { %v257_v48 = vpop.trf.xlu1 }
  0xef   : > { %v225_v49 = vpop.trf.xlu0  ;;  %282 = vst [vmem:[%s958_s5 + $0x88] sm:$0xff] %v257_v48 }
  0xf0   : > { %281 = vst [vmem:[%s958_s5 + $0x80] sm:$0xff] %v225_v49 }
  0xf2   : > { %v258_v50 = vpop.trf.xlu1 }
  0xf3   : > { %v226_v51 = vpop.trf.xlu0  ;;  %284 = vst [vmem:[%s958_s5 + $0x98] sm:$0xff] %v258_v50 }
  0xf4   : > { %283 = vst [vmem:[%s958_s5 + $0x90] sm:$0xff] %v226_v51 }
  0xf6   : > { %v259_v52 = vpop.trf.xlu1 }
  0xf7   : > { %v227_v53 = vpop.trf.xlu0  ;;  %286 = vst [vmem:[%s958_s5 + $0xa8] sm:$0xff] %v259_v52 }
  0xf8   : > { %285 = vst [vmem:[%s958_s5 + $0xa0] sm:$0xff] %v227_v53 }
  0xfa   : > { %v260_v54 = vpop.trf.xlu1 }
  0xfb   : > { %v228_v55 = vpop.trf.xlu0  ;;  %288 = vst [vmem:[%s958_s5 + $0xb8] sm:$0xff] %v260_v54 }
  0xfc   : > { %287 = vst [vmem:[%s958_s5 + $0xb0] sm:$0xff] %v228_v55 }
  0xfe   : > { %v261_v56 = vpop.trf.xlu1 }
  0xff   : > { %v229_v57 = vpop.trf.xlu0  ;;  %290 = vst [vmem:[%s958_s5 + $0xc8] sm:$0xff] %v261_v56 }
 0x100   : > { %289 = vst [vmem:[%s958_s5 + $0xc0] sm:$0xff] %v229_v57 }
 0x102   : > { %v262_v58 = vpop.trf.xlu1 }
 0x103   : > { %v230_v59 = vpop.trf.xlu0  ;;  %292 = vst [vmem:[%s958_s5 + $0xd8] sm:$0xff] %v262_v58 }
 0x104   : > { %291 = vst [vmem:[%s958_s5 + $0xd0] sm:$0xff] %v230_v59 }
 0x106   : > { %v263_v60 = vpop.trf.xlu1 }
 0x107   : > { %v231_v61 = vpop.trf.xlu0  ;;  %294 = vst [vmem:[%s958_s5 + $0xe8] sm:$0xff] %v263_v60 }
 0x108   : > { %293 = vst [vmem:[%s958_s5 + $0xe0] sm:$0xff] %v231_v61 }
 0x10a   : > { %v264_v62 = vpop.trf.xlu1 }
 0x10b   : > { %v232_v63 = vpop.trf.xlu0  ;;  %296 = vst [vmem:[%s958_s5 + $0xf8] sm:$0xff] %v264_v62 }
 0x10c   : > { %295 = vst [vmem:[%s958_s5 + $0xf0] sm:$0xff] %v232_v63 }
 0x10d   : > { %604 = shalt.err (!%p601_p9)
}
 0x10e   : > { %s605_s17 = scalar_lea.hbm %s997_s13, 4096  ;;  %s609_s22 = scalar_lea.hbm %s1079_s1, 32768 }
 0x10f   : > { %p606_p5 = scmp.ne.s32.totalorder %s997_s13, %s605_s17  ;;  %p610_p8 = scmp.lt.u32.totalorder %s997_s13, %s1079_s1 }
 0x110   : > { %p611_p10 = scmp.lt.u32.totalorder %s609_s22, %s605_s17  ;;  %p613_p7 = scmp.lt.u32.totalorder %s605_s17, %s997_s13 }
 0x111   : > { %p607_p11 = pnand %p606_p5, %p1096_p1 }
 0x112   : > { %p612_p13 = por %p611_p10, %p610_p8 }
 0x113   : > { %p608_p12 = pneg %p607_p11 }
 0x114   : > { %p614_p2 = por %p613_p7, %p612_p13 }
 0x116   : > { %p615_p4 = pnand %p614_p2, %p608_p12 }
 0x118   : > { %618 = shalt.err (!%p615_p4)
}
 0x119   : > { %s736_s4 = smov 256   ;;  %s737_s30 = smov 512  }
 0x11a   : > { %s738_s25 = smov 16  }
 0x11b   : > { %439 = dma.vmem_to_hbm [thread:$0]  (%p1096_p1), %s999_s14, 4096, %s997_s13, %s1005_s24, %s736_s4, %s737_s30, %s738_s25  }
 0x11c PF: > { %p450_p0 = scmp.ge.s32.totalorder %s729_s18, 2  ;;  %s331_s12 = sand.u32 1, %s681_s6  }
 0x11d   : > { %p1097_p3 = scmp.ne.s32.totalorder %s1094_s21, 0  ;;  %s332_s23 = scalar_lea.sflag [#allocation4], %s331_s12 }
 0x11f   : > { %p446_p6 = pnand %p450_p0, %p1097_p3 }
 0x121   : > { %676 = dma.done.wait (!%p446_p6), %s332_s23, 4096  }
 0x122   : > { %678 = vsyncadd (!%p446_p6), %s332_s23, 4294963200  ;;  %s17_s18 = sadd.s32 1, %s729_s18   ;;  %s1099_s9 = sld [smem:[#allocation12_spill]] }
 0x123   : > { %p1034_p9 = scmp.ge.s32.totalorder %s17_s18, 10   ;;  %s1100_s14 = sld [smem:[#allocation8_spill]] }
 0x124   : > { %s1101_s21 = sld [smem:[#allocation9_spill]]  ;;  %s1102_s24 = sld [smem:[#allocation10_spill]] }
 0x125   : > { %s1103_s17 = sld [smem:[#allocation11_spill]]  ;;  %s1104_s6 = smov %s685_s7 }
 0x126   : > { %s1105_s7 = smov %s689_s8  ;;  %s1110_s12 = smov %s717_s15 }
 0x127   : > { %s1111_s13 = smov %s721_s16  ;;  %16 = sbr.rel (!%p1034_p9) target bundleno = 10 (0xa), region = 69 }
 0x128   : > { %s1106_s8 = smov %s1099_s9  ;;  %s1107_s9 = smov %s697_s10 }
 0x129   : > { %s1108_s10 = smov %s701_s11  ;;  %s1109_s11 = smov %s862_s19 }
 0x12a   : > { %s1112_s15 = smov %s1101_s21  ;;  %s1113_s16 = smov %s1102_s24 }
 0x12e   :  { %337 = vsyncpa [#allocation3], 1 }
 0x12f   :  { %339 = vsyncpa [#allocation3 + $0x1], 1 }
 0x130   :  { %340 = vsyncpa [#allocation4], 1 }
 0x131   :  { %342 = vsyncpa [#allocation4 + $0x1], 1 }

</bundles_post_ra>
